<compile_context>
chip_gen: v6e
topology: v6e:2x2x1
jax: 0.10.0
libtpu: 0.0.40
codegen_flags: <defaults>
</compile_context>

<pallas_src>
import functools
import math

import jax
import jax.numpy as jnp
from jax.experimental import pallas as pl
from jax.experimental.pallas import tpu as pltpu

PAD = 128           # lane-dense width every layer is padded to (== clip_dim)
MAX_TILE_B = 512    # target batch-tile rows (HBM-roofline sweet spot)
MIN_SPLIT_B = 256   # min rows/tile worth splitting into >=2 grid steps (v7x 2 TCs)


# ----------------------------------------------------------------------------
# Fused kernel: the whole autoencoder for one batch tile.
# ----------------------------------------------------------------------------
def _apply_act(y, act):
    if act == "relu":
        return jnp.maximum(y, 0.0)
    if act == "tanh":
        return jnp.tanh(y)
    if act == "sigmoid":
        # Exact sigmoid (EUP exp + divide) — addresses the approx-reciprocal
        # parity concern; the EUP slot is otherwise idle so this is free.
        return jax.nn.sigmoid(y)
    if act == "none":
        return y
    raise NotImplementedError(act)


def _fused_ae_kernel(x_ref, w_ref, s_ref, d_ref, z_ref, *, acts, z_index):
    # acts / z_index are static -> the 10-layer loop is fully unrolled at trace.
    h = x_ref[...]                                        # (TILE_B, 128) f32
    for l, act in enumerate(acts):
        y = jnp.dot(h.astype(jnp.bfloat16), w_ref[l],     # bf16 MXU, f32 acc
                    preferred_element_type=jnp.float32)
        y = y + s_ref[l]                                  # folded bias*BN shift
        h = _apply_act(y, act)                            # f32 epilogue (v5e-safe)
        if l == z_index:
            z_ref[...] = h.astype(z_ref.dtype)            # bf16 padded z
    d_ref[...] = h.astype(d_ref.dtype)                    # bf16 padded d
    # TODO(synk): nn.Dropout is a no-op in eval mode; not emitted in the kernel.


# ----------------------------------------------------------------------------
# Parameter construction mirroring AutoEncoder.__init__ (BN folded, padded).
# ----------------------------------------------------------------------------
def build_autoencoder_params(key, *, clip_dim=128, latent_dim=16, l_mult=1,
                             min_size=0, max_size=4,
                             act="relu", z_act="tanh", final_act="sigmoid"):
    size = max_size - min_size
    min_dim = 32
    hidden_dims = [int(clip_dim - i * (clip_dim - min_dim) / (size - 1))
                   for i in range(size)]
    hidden_dims.append(latent_dim)                        # [128, 96, 64, 32, 16]

    # Layer plan: (din, dout, activation), in execution order.
    layer_dims, layer_acts = [], []
    for _ in range(l_mult):                               # encoder: l_mult h0->h0
        layer_dims.append((hidden_dims[0], hidden_dims[0])); layer_acts.append(act)
    for i in range(len(hidden_dims) - 2):                 # shrinking chain
        layer_dims.append((hidden_dims[i], hidden_dims[i + 1])); layer_acts.append(act)
    z_index = len(layer_dims)                             # z_layer
    layer_dims.append((hidden_dims[-2], hidden_dims[-1])); layer_acts.append(z_act)
    rev = list(reversed(hidden_dims))                     # decoder (l_mult>0 branch)
    for i in range(len(rev) - 1):
        layer_dims.append((rev[i], rev[i + 1])); layer_acts.append(act)
    for _ in range(l_mult - 1):
        layer_dims.append((rev[-1], rev[-1])); layer_acts.append(act)
    layer_dims.append((rev[-1], rev[-1])); layer_acts.append(final_act)

    eps = 1e-5
    bn_scale = 1.0 / math.sqrt(1.0 + eps)                 # BN eval: mean=0, var=1
    num_layers = len(layer_dims)
    keys = jax.random.split(key, 2 * num_layers)

    w_stack = jnp.zeros((num_layers, PAD, PAD), jnp.float32)
    s_stack = jnp.zeros((num_layers, 1, PAD), jnp.float32)
    for l, (din, dout) in enumerate(layer_dims):
        w = jax.random.normal(keys[2 * l], (din, dout), jnp.float32) * 0.05
        b = jax.random.normal(keys[2 * l + 1], (dout,), jnp.float32) * 0.05
        # Fold BatchNorm (eval) into the Linear; zero-pad to 128x128.
        w_stack = w_stack.at[l, :din, :dout].set(w * bn_scale)
        s_stack = s_stack.at[l, 0, :dout].set(b * bn_scale)

    return {
        "w": w_stack.astype(jnp.bfloat16),                # (L,128,128) bf16
        "shift": s_stack,                                 # (L,1,128) f32
        "acts": tuple(layer_acts),
        "z_index": z_index,
        "latent_dim": latent_dim,
        "clip_dim": clip_dim,
    }


# ----------------------------------------------------------------------------
# Batch tiling plan: large (<=512-row) 16-aligned tiles; >=2 grid steps when
# there is enough batch so v7x's two TensorCores both get work.
# ----------------------------------------------------------------------------
def _plan_batch(B):
    b_al = max(16, ((B + 15) // 16) * 16)                 # 16-row (bf16-pack) align
    n_tiles = (b_al + MAX_TILE_B - 1) // MAX_TILE_B
    if n_tiles == 1 and b_al >= 2 * MIN_SPLIT_B:
        n_tiles = 2                                       # feed both v7x TCs
    tile_b = ((((b_al + n_tiles - 1) // n_tiles) + 15) // 16) * 16
    return tile_b, tile_b * n_tiles


# ----------------------------------------------------------------------------
# ModularModel.forward -> AutoEncoder.forward -> [d, z]
# ----------------------------------------------------------------------------
def modular_model_forward(params, x):
    B, din = x.shape
    assert din == params["clip_dim"] == PAD

    tile_b, b_pad = _plan_batch(B)
    if b_pad != B:
        x = jnp.pad(x, ((0, b_pad - B), (0, 0)))

    num_layers = params["w"].shape[0]
    kernel = functools.partial(_fused_ae_kernel,
                               acts=params["acts"], z_index=params["z_index"])

    d_pad, z_pad = pl.pallas_call(
        kernel,
        # bf16 writeback halves HBM output bytes (kernel is memory-bound);
        # sliced + cast back to f32 below.
        out_shape=(jax.ShapeDtypeStruct((b_pad, PAD), jnp.bfloat16),
                   jax.ShapeDtypeStruct((b_pad, PAD), jnp.bfloat16)),
        grid=(b_pad // tile_b,),
        in_specs=[
            pl.BlockSpec((tile_b, PAD), lambda i: (i, 0)),              # activations
            pl.BlockSpec((num_layers, PAD, PAD), lambda i: (0, 0, 0)),  # weights (resident)
            pl.BlockSpec((num_layers, 1, PAD), lambda i: (0, 0, 0)),    # folded shifts
        ],
        out_specs=(
            pl.BlockSpec((tile_b, PAD), lambda i: (i, 0)),              # d (bf16, padded)
            pl.BlockSpec((tile_b, PAD), lambda i: (i, 0)),              # z (bf16, padded)
        ),
        compiler_params=pltpu.CompilerParams(
            dimension_semantics=("parallel",),
            # 32 MiB comfortably covers double-buffered 512-row tiles + the
            # resident weight stack on every generation (incl. v7x's 64 MiB).
            vmem_limit_bytes=32 << 20,
        ),
    )(x, params["w"], params["shift"])

    d = d_pad[:B].astype(jnp.float32)
    z = z_pad[:B, :params["latent_dim"]].astype(jnp.float32)
    return [d, z]


if __name__ == "__main__":
    key = jax.random.PRNGKey(0)
    k_params, k_x = jax.random.split(key)

    CLIP_DIM, LATENT_DIM, BATCH = 128, 16, 8
    params = build_autoencoder_params(k_params, clip_dim=CLIP_DIM,
                                      latent_dim=LATENT_DIM)

    x = jax.random.normal(k_x, (BATCH, CLIP_DIM), jnp.float32)

    d, z = modular_model_forward(params, x)
    jax.block_until_ready(d)
    jax.block_until_ready(z)

    assert d.shape == (BATCH, CLIP_DIM) and z.shape == (BATCH, LATENT_DIM)
    print("KERNEL_OK")
</pallas_src>

<mosaic_0001>
module attributes {stable_mosaic.version = 11 : i64} {
  func.func @_fused_ae_kernel(%arg0: i32, %arg1: memref<16x128xf32, #tpu.memory_space<vmem>>, %arg2: memref<10x128x128xbf16, #tpu.memory_space<vmem>>, %arg3: memref<10x1x128xf32, #tpu.memory_space<vmem>>, %arg4: memref<16x128xbf16, #tpu.memory_space<vmem>>, %arg5: memref<16x128xbf16, #tpu.memory_space<vmem>>) attributes {dimension_semantics = [#tpu.dimension_semantics<parallel>], iteration_bounds = array<i64: 1>, scalar_prefetch = 0 : i64, scratch_operands = 0 : i64, tpu.core_type = #tpu.core_type<tc>, window_params = [{transform_indices = @transform_0, window_bounds = array<i64: 16, 128>}, {pipeline_mode = #tpu.pipeline_mode<synchronous>, transform_indices = @transform_1, window_bounds = array<i64: 10, 128, 128>}, {pipeline_mode = #tpu.pipeline_mode<synchronous>, transform_indices = @transform_2, window_bounds = array<i64: 10, 1, 128>}, {transform_indices = @transform_3, window_bounds = array<i64: 16, 128>}, {transform_indices = @transform_4, window_bounds = array<i64: 16, 128>}]} {
    %c0 = arith.constant 0 : index
    %c0_0 = arith.constant 0 : index
    %0 = vector.load %arg1[%c0, %c0_0] : memref<16x128xf32, #tpu.memory_space<vmem>>, vector<16x128xf32>
    %1 = arith.truncf %0 : vector<16x128xf32> to vector<16x128xbf16>
    %c0_1 = arith.constant 0 : index
    %c0_2 = arith.constant 0 : index
    %c0_3 = arith.constant 0 : index
    %2 = vector.load %arg2[%c0_1, %c0_2, %c0_3] : memref<10x128x128xbf16, #tpu.memory_space<vmem>>, vector<1x128x128xbf16>
    %3 = vector.shape_cast %2 : vector<1x128x128xbf16> to vector<128x128xbf16>
    %cst = arith.constant dense<0.000000e+00> : vector<16x128xf32>
    %4 = tpu.matmul %1, %3, %cst {dimension_numbers = #tpu.dot_dimension_numbers<[1], [0], [0], [1], [0, 0, 1, 1], [], []>} : vector<16x128xbf16>, vector<128x128xbf16>, vector<16x128xf32> -> vector<16x128xf32>
    %c0_4 = arith.constant 0 : index
    %c0_5 = arith.constant 0 : index
    %c0_6 = arith.constant 0 : index
    %5 = vector.load %arg3[%c0_4, %c0_5, %c0_6] : memref<10x1x128xf32, #tpu.memory_space<vmem>>, vector<1x1x128xf32>
    %6 = vector.shape_cast %5 : vector<1x1x128xf32> to vector<1x128xf32>
    %7 = vector.broadcast %6 : vector<1x128xf32> to vector<16x128xf32>
    %8 = arith.addf %4, %7 : vector<16x128xf32>
    %cst_7 = arith.constant 0.000000e+00 : f32
    %9 = vector.broadcast %cst_7 : f32 to vector<16x128xf32>
    %10 = arith.maximumf %8, %9 : vector<16x128xf32>
    %11 = arith.truncf %10 : vector<16x128xf32> to vector<16x128xbf16>
    %c1 = arith.constant 1 : index
    %c0_8 = arith.constant 0 : index
    %c0_9 = arith.constant 0 : index
    %12 = vector.load %arg2[%c1, %c0_8, %c0_9] : memref<10x128x128xbf16, #tpu.memory_space<vmem>>, vector<1x128x128xbf16>
    %13 = vector.shape_cast %12 : vector<1x128x128xbf16> to vector<128x128xbf16>
    %cst_10 = arith.constant dense<0.000000e+00> : vector<16x128xf32>
    %14 = tpu.matmul %11, %13, %cst_10 {dimension_numbers = #tpu.dot_dimension_numbers<[1], [0], [0], [1], [0, 0, 1, 1], [], []>} : vector<16x128xbf16>, vector<128x128xbf16>, vector<16x128xf32> -> vector<16x128xf32>
    %c1_11 = arith.constant 1 : index
    %c0_12 = arith.constant 0 : index
    %c0_13 = arith.constant 0 : index
    %15 = vector.load %arg3[%c1_11, %c0_12, %c0_13] : memref<10x1x128xf32, #tpu.memory_space<vmem>>, vector<1x1x128xf32>
    %16 = vector.shape_cast %15 : vector<1x1x128xf32> to vector<1x128xf32>
    %17 = vector.broadcast %16 : vector<1x128xf32> to vector<16x128xf32>
    %18 = arith.addf %14, %17 : vector<16x128xf32>
    %cst_14 = arith.constant 0.000000e+00 : f32
    %19 = vector.broadcast %cst_14 : f32 to vector<16x128xf32>
    %20 = arith.maximumf %18, %19 : vector<16x128xf32>
    %21 = arith.truncf %20 : vector<16x128xf32> to vector<16x128xbf16>
    %c2 = arith.constant 2 : index
    %c0_15 = arith.constant 0 : index
    %c0_16 = arith.constant 0 : index
    %22 = vector.load %arg2[%c2, %c0_15, %c0_16] : memref<10x128x128xbf16, #tpu.memory_space<vmem>>, vector<1x128x128xbf16>
    %23 = vector.shape_cast %22 : vector<1x128x128xbf16> to vector<128x128xbf16>
    %cst_17 = arith.constant dense<0.000000e+00> : vector<16x128xf32>
    %24 = tpu.matmul %21, %23, %cst_17 {dimension_numbers = #tpu.dot_dimension_numbers<[1], [0], [0], [1], [0, 0, 1, 1], [], []>} : vector<16x128xbf16>, vector<128x128xbf16>, vector<16x128xf32> -> vector<16x128xf32>
    %c2_18 = arith.constant 2 : index
    %c0_19 = arith.constant 0 : index
    %c0_20 = arith.constant 0 : index
    %25 = vector.load %arg3[%c2_18, %c0_19, %c0_20] : memref<10x1x128xf32, #tpu.memory_space<vmem>>, vector<1x1x128xf32>
    %26 = vector.shape_cast %25 : vector<1x1x128xf32> to vector<1x128xf32>
    %27 = vector.broadcast %26 : vector<1x128xf32> to vector<16x128xf32>
    %28 = arith.addf %24, %27 : vector<16x128xf32>
    %cst_21 = arith.constant 0.000000e+00 : f32
    %29 = vector.broadcast %cst_21 : f32 to vector<16x128xf32>
    %30 = arith.maximumf %28, %29 : vector<16x128xf32>
    %31 = arith.truncf %30 : vector<16x128xf32> to vector<16x128xbf16>
    %c3 = arith.constant 3 : index
    %c0_22 = arith.constant 0 : index
    %c0_23 = arith.constant 0 : index
    %32 = vector.load %arg2[%c3, %c0_22, %c0_23] : memref<10x128x128xbf16, #tpu.memory_space<vmem>>, vector<1x128x128xbf16>
    %33 = vector.shape_cast %32 : vector<1x128x128xbf16> to vector<128x128xbf16>
    %cst_24 = arith.constant dense<0.000000e+00> : vector<16x128xf32>
    %34 = tpu.matmul %31, %33, %cst_24 {dimension_numbers = #tpu.dot_dimension_numbers<[1], [0], [0], [1], [0, 0, 1, 1], [], []>} : vector<16x128xbf16>, vector<128x128xbf16>, vector<16x128xf32> -> vector<16x128xf32>
    %c3_25 = arith.constant 3 : index
    %c0_26 = arith.constant 0 : index
    %c0_27 = arith.constant 0 : index
    %35 = vector.load %arg3[%c3_25, %c0_26, %c0_27] : memref<10x1x128xf32, #tpu.memory_space<vmem>>, vector<1x1x128xf32>
    %36 = vector.shape_cast %35 : vector<1x1x128xf32> to vector<1x128xf32>
    %37 = vector.broadcast %36 : vector<1x128xf32> to vector<16x128xf32>
    %38 = arith.addf %34, %37 : vector<16x128xf32>
    %cst_28 = arith.constant 0.000000e+00 : f32
    %39 = vector.broadcast %cst_28 : f32 to vector<16x128xf32>
    %40 = arith.maximumf %38, %39 : vector<16x128xf32>
    %41 = arith.truncf %40 : vector<16x128xf32> to vector<16x128xbf16>
    %c4 = arith.constant 4 : index
    %c0_29 = arith.constant 0 : index
    %c0_30 = arith.constant 0 : index
    %42 = vector.load %arg2[%c4, %c0_29, %c0_30] : memref<10x128x128xbf16, #tpu.memory_space<vmem>>, vector<1x128x128xbf16>
    %43 = vector.shape_cast %42 : vector<1x128x128xbf16> to vector<128x128xbf16>
    %cst_31 = arith.constant dense<0.000000e+00> : vector<16x128xf32>
    %44 = tpu.matmul %41, %43, %cst_31 {dimension_numbers = #tpu.dot_dimension_numbers<[1], [0], [0], [1], [0, 0, 1, 1], [], []>} : vector<16x128xbf16>, vector<128x128xbf16>, vector<16x128xf32> -> vector<16x128xf32>
    %c4_32 = arith.constant 4 : index
    %c0_33 = arith.constant 0 : index
    %c0_34 = arith.constant 0 : index
    %45 = vector.load %arg3[%c4_32, %c0_33, %c0_34] : memref<10x1x128xf32, #tpu.memory_space<vmem>>, vector<1x1x128xf32>
    %46 = vector.shape_cast %45 : vector<1x1x128xf32> to vector<1x128xf32>
    %47 = vector.broadcast %46 : vector<1x128xf32> to vector<16x128xf32>
    %48 = arith.addf %44, %47 : vector<16x128xf32>
    %49 = math.tanh %48 : vector<16x128xf32>
    %50 = arith.truncf %49 : vector<16x128xf32> to vector<16x128xbf16>
    %c0_35 = arith.constant 0 : index
    %c0_36 = arith.constant 0 : index
    %51 = vector.load %arg5[%c0_35, %c0_36] : memref<16x128xbf16, #tpu.memory_space<vmem>>, vector<16x128xbf16>
    tpu.vector_store %arg5[%c0_35, %c0_36], %50 {strides = array<i32>} : memref<16x128xbf16, #tpu.memory_space<vmem>>, vector<16x128xbf16>,
    %52 = arith.truncf %49 : vector<16x128xf32> to vector<16x128xbf16>
    %c5 = arith.constant 5 : index
    %c0_37 = arith.constant 0 : index
    %c0_38 = arith.constant 0 : index
    %53 = vector.load %arg2[%c5, %c0_37, %c0_38] : memref<10x128x128xbf16, #tpu.memory_space<vmem>>, vector<1x128x128xbf16>
    %54 = vector.shape_cast %53 : vector<1x128x128xbf16> to vector<128x128xbf16>
    %cst_39 = arith.constant dense<0.000000e+00> : vector<16x128xf32>
    %55 = tpu.matmul %52, %54, %cst_39 {dimension_numbers = #tpu.dot_dimension_numbers<[1], [0], [0], [1], [0, 0, 1, 1], [], []>} : vector<16x128xbf16>, vector<128x128xbf16>, vector<16x128xf32> -> vector<16x128xf32>
    %c5_40 = arith.constant 5 : index
    %c0_41 = arith.constant 0 : index
    %c0_42 = arith.constant 0 : index
    %56 = vector.load %arg3[%c5_40, %c0_41, %c0_42] : memref<10x1x128xf32, #tpu.memory_space<vmem>>, vector<1x1x128xf32>
    %57 = vector.shape_cast %56 : vector<1x1x128xf32> to vector<1x128xf32>
    %58 = vector.broadcast %57 : vector<1x128xf32> to vector<16x128xf32>
    %59 = arith.addf %55, %58 : vector<16x128xf32>
    %cst_43 = arith.constant 0.000000e+00 : f32
    %60 = vector.broadcast %cst_43 : f32 to vector<16x128xf32>
    %61 = arith.maximumf %59, %60 : vector<16x128xf32>
    %62 = arith.truncf %61 : vector<16x128xf32> to vector<16x128xbf16>
    %c6 = arith.constant 6 : index
    %c0_44 = arith.constant 0 : index
    %c0_45 = arith.constant 0 : index
    %63 = vector.load %arg2[%c6, %c0_44, %c0_45] : memref<10x128x128xbf16, #tpu.memory_space<vmem>>, vector<1x128x128xbf16>
    %64 = vector.shape_cast %63 : vector<1x128x128xbf16> to vector<128x128xbf16>
    %cst_46 = arith.constant dense<0.000000e+00> : vector<16x128xf32>
    %65 = tpu.matmul %62, %64, %cst_46 {dimension_numbers = #tpu.dot_dimension_numbers<[1], [0], [0], [1], [0, 0, 1, 1], [], []>} : vector<16x128xbf16>, vector<128x128xbf16>, vector<16x128xf32> -> vector<16x128xf32>
    %c6_47 = arith.constant 6 : index
    %c0_48 = arith.constant 0 : index
    %c0_49 = arith.constant 0 : index
    %66 = vector.load %arg3[%c6_47, %c0_48, %c0_49] : memref<10x1x128xf32, #tpu.memory_space<vmem>>, vector<1x1x128xf32>
    %67 = vector.shape_cast %66 : vector<1x1x128xf32> to vector<1x128xf32>
    %68 = vector.broadcast %67 : vector<1x128xf32> to vector<16x128xf32>
    %69 = arith.addf %65, %68 : vector<16x128xf32>
    %cst_50 = arith.constant 0.000000e+00 : f32
    %70 = vector.broadcast %cst_50 : f32 to vector<16x128xf32>
    %71 = arith.maximumf %69, %70 : vector<16x128xf32>
    %72 = arith.truncf %71 : vector<16x128xf32> to vector<16x128xbf16>
    %c7 = arith.constant 7 : index
    %c0_51 = arith.constant 0 : index
    %c0_52 = arith.constant 0 : index
    %73 = vector.load %arg2[%c7, %c0_51, %c0_52] : memref<10x128x128xbf16, #tpu.memory_space<vmem>>, vector<1x128x128xbf16>
    %74 = vector.shape_cast %73 : vector<1x128x128xbf16> to vector<128x128xbf16>
    %cst_53 = arith.constant dense<0.000000e+00> : vector<16x128xf32>
    %75 = tpu.matmul %72, %74, %cst_53 {dimension_numbers = #tpu.dot_dimension_numbers<[1], [0], [0], [1], [0, 0, 1, 1], [], []>} : vector<16x128xbf16>, vector<128x128xbf16>, vector<16x128xf32> -> vector<16x128xf32>
    %c7_54 = arith.constant 7 : index
    %c0_55 = arith.constant 0 : index
    %c0_56 = arith.constant 0 : index
    %76 = vector.load %arg3[%c7_54, %c0_55, %c0_56] : memref<10x1x128xf32, #tpu.memory_space<vmem>>, vector<1x1x128xf32>
    %77 = vector.shape_cast %76 : vector<1x1x128xf32> to vector<1x128xf32>
    %78 = vector.broadcast %77 : vector<1x128xf32> to vector<16x128xf32>
    %79 = arith.addf %75, %78 : vector<16x128xf32>
    %cst_57 = arith.constant 0.000000e+00 : f32
    %80 = vector.broadcast %cst_57 : f32 to vector<16x128xf32>
    %81 = arith.maximumf %79, %80 : vector<16x128xf32>
    %82 = arith.truncf %81 : vector<16x128xf32> to vector<16x128xbf16>
    %c8 = arith.constant 8 : index
    %c0_58 = arith.constant 0 : index
    %c0_59 = arith.constant 0 : index
    %83 = vector.load %arg2[%c8, %c0_58, %c0_59] : memref<10x128x128xbf16, #tpu.memory_space<vmem>>, vector<1x128x128xbf16>
    %84 = vector.shape_cast %83 : vector<1x128x128xbf16> to vector<128x128xbf16>
    %cst_60 = arith.constant dense<0.000000e+00> : vector<16x128xf32>
    %85 = tpu.matmul %82, %84, %cst_60 {dimension_numbers = #tpu.dot_dimension_numbers<[1], [0], [0], [1], [0, 0, 1, 1], [], []>} : vector<16x128xbf16>, vector<128x128xbf16>, vector<16x128xf32> -> vector<16x128xf32>
    %c8_61 = arith.constant 8 : index
    %c0_62 = arith.constant 0 : index
    %c0_63 = arith.constant 0 : index
    %86 = vector.load %arg3[%c8_61, %c0_62, %c0_63] : memref<10x1x128xf32, #tpu.memory_space<vmem>>, vector<1x1x128xf32>
    %87 = vector.shape_cast %86 : vector<1x1x128xf32> to vector<1x128xf32>
    %88 = vector.broadcast %87 : vector<1x128xf32> to vector<16x128xf32>
    %89 = arith.addf %85, %88 : vector<16x128xf32>
    %cst_64 = arith.constant 0.000000e+00 : f32
    %90 = vector.broadcast %cst_64 : f32 to vector<16x128xf32>
    %91 = arith.maximumf %89, %90 : vector<16x128xf32>
    %92 = arith.truncf %91 : vector<16x128xf32> to vector<16x128xbf16>
    %c9 = arith.constant 9 : index
    %c0_65 = arith.constant 0 : index
    %c0_66 = arith.constant 0 : index
    %93 = vector.load %arg2[%c9, %c0_65, %c0_66] : memref<10x128x128xbf16, #tpu.memory_space<vmem>>, vector<1x128x128xbf16>
    %94 = vector.shape_cast %93 : vector<1x128x128xbf16> to vector<128x128xbf16>
    %cst_67 = arith.constant dense<0.000000e+00> : vector<16x128xf32>
    %95 = tpu.matmul %92, %94, %cst_67 {dimension_numbers = #tpu.dot_dimension_numbers<[1], [0], [0], [1], [0, 0, 1, 1], [], []>} : vector<16x128xbf16>, vector<128x128xbf16>, vector<16x128xf32> -> vector<16x128xf32>
    %c9_68 = arith.constant 9 : index
    %c0_69 = arith.constant 0 : index
    %c0_70 = arith.constant 0 : index
    %96 = vector.load %arg3[%c9_68, %c0_69, %c0_70] : memref<10x1x128xf32, #tpu.memory_space<vmem>>, vector<1x1x128xf32>
    %97 = vector.shape_cast %96 : vector<1x1x128xf32> to vector<1x128xf32>
    %98 = vector.broadcast %97 : vector<1x128xf32> to vector<16x128xf32>
    %99 = arith.addf %95, %98 : vector<16x128xf32>
    %100 = arith.negf %99 : vector<16x128xf32>
    %101 = math.exp %100 : vector<16x128xf32>
    %cst_71 = arith.constant 1.000000e+00 : f32
    %102 = vector.broadcast %cst_71 : f32 to vector<16x128xf32>
    %103 = arith.addf %102, %101 : vector<16x128xf32>
    %104 = arith.divf %102, %103 : vector<16x128xf32>
    %105 = arith.truncf %104 : vector<16x128xf32> to vector<16x128xbf16>
    %c0_72 = arith.constant 0 : index
    %c0_73 = arith.constant 0 : index
    %106 = vector.load %arg4[%c0_72, %c0_73] : memref<16x128xbf16, #tpu.memory_space<vmem>>, vector<16x128xbf16>
    tpu.vector_store %arg4[%c0_72, %c0_73], %105 {strides = array<i32>} : memref<16x128xbf16, #tpu.memory_space<vmem>>, vector<16x128xbf16>,
    return
  }
  func.func @transform_0(%arg0: i32) -> (i32, i32) {
    %c0_i32 = arith.constant 0 : i32
    %c0_i32_0 = arith.constant 0 : i32
    return %arg0, %c0_i32 : i32, i32
  }
  func.func @transform_1(%arg0: i32) -> (i32, i32, i32) {
    %c0_i32 = arith.constant 0 : i32
    %c0_i32_0 = arith.constant 0 : i32
    %c0_i32_1 = arith.constant 0 : i32
    %c0_i32_2 = arith.constant 0 : i32
    return %c0_i32, %c0_i32_0, %c0_i32_1 : i32, i32, i32
  }
  func.func @transform_2(%arg0: i32) -> (i32, i32, i32) {
    %c0_i32 = arith.constant 0 : i32
    %c0_i32_0 = arith.constant 0 : i32
    %c0_i32_1 = arith.constant 0 : i32
    %c0_i32_2 = arith.constant 0 : i32
    return %c0_i32, %c0_i32_0, %c0_i32_1 : i32, i32, i32
  }
  func.func @transform_3(%arg0: i32) -> (i32, i32) {
    %c0_i32 = arith.constant 0 : i32
    %c0_i32_0 = arith.constant 0 : i32
    return %arg0, %c0_i32 : i32, i32
  }
  func.func @transform_4(%arg0: i32) -> (i32, i32) {
    %c0_i32 = arith.constant 0 : i32
    %c0_i32_0 = arith.constant 0 : i32
    return %arg0, %c0_i32 : i32, i32
  }
}

</mosaic_0001>

<bundles_post_ra>
// kernel: tpu_custom_call.1
= control target key start
LH: loop header
LB: loop body
LE: loop exit
PB: predicated region body
PF: predicated region fallthrough
CT: control target
= control target key end

     0   :  { %10 = vsyncpa [#allocation3], 0  ;;  %s2068_s0 = inlined_call_operand.hbm [shape: f32[16,128], index: 0, kind: input, shape index: {}]   ;;  %s2069_s1 = inlined_call_operand.hbm [shape: bf16[10,128,128], index: 1, kind: input, shape index: {}]   ;;  %s2070_s2 = inlined_call_operand.hbm [shape: f32[10,1,128], index: 2, kind: input, shape index: {}]   ;;  %s2071_s3 = inlined_call_operand.hbm [shape: bf16[16,128], index: 3, kind: output, shape index: {0}]   ;;  %s2072_s4 = inlined_call_operand.hbm [shape: bf16[16,128], index: 4, kind: output, shape index: {1}]  }
   0x1   :  { %11 = vsyncpa [#allocation6], 0 }
   0x2   :  { %12 = vsyncpa [#allocation4], 0 }
   0x3   :  { %13 = vsyncpa [#allocation10], 0  ;;  %s1906_s15 = smov [#allocation5]  }
   0x4   :  { %s31_s16 = sshll.u32 %s1906_s15, 4  ;;  %s32_s16 = int_to_ptr.vmem [resolvable:$true] %s31_s16 }
   0x5   :  { %s1806_s17 = scalar_lea.vmem %s32_s16, 10240  ;;  %p1811_p1 = scmp.lt.s32.totalorder %s32_s16, %s32_s16 }
   0x6   :  { %p1807_p0 = scmp.ne.s32.totalorder %s32_s16, %s1806_s17  ;;  %p1812_p2 = scmp.lt.s32.totalorder %s1806_s17, %s1806_s17 }
   0x8   :  { %p1813_p3 = por %p1812_p2, %p1811_p1 }
   0xa   :  { %p1814_p4 = pnand %p1813_p3, %p1807_p0 }
   0xc   :  { %1817 = shalt.err (!%p1814_p4)
}
   0xd   :  { %s1907_s18 = smov 64   ;;  %s1908_s19 = smov 4  }
   0xe   :  { %37 = dma.hbm_to_vmem [thread:$0]  %s2069_s1, 10240, %s32_s16, [#allocation6], %s1907_s18, %s1907_s18, %s1908_s19  }
   0xf   :  { %s1909_s22 = smov [#allocation2]  }
  0x10   :  { %s19_s23 = sshll.u32 %s1909_s22, 4  ;;  %s20_s23 = int_to_ptr.vmem [resolvable:$true] %s19_s23 }
  0x11   :  { %s1826_s24 = scalar_lea.vmem %s20_s23, 256  ;;  %p1831_p6 = scmp.lt.s32.totalorder %s20_s23, %s20_s23 }
  0x12   :  { %p1827_p5 = scmp.ne.s32.totalorder %s20_s23, %s1826_s24  ;;  %p1832_p7 = scmp.lt.s32.totalorder %s1826_s24, %s1826_s24 }
  0x14   :  { %p1833_p8 = por %p1832_p7, %p1831_p6 }
  0x16   :  { %p1834_p9 = pnand %p1833_p8, %p1827_p5 }
  0x18   :  { %1837 = shalt.err (!%p1834_p9)
}
  0x19   :  { %s1910_s25 = smov 128   ;;  %s1911_s26 = smov 8  }
  0x1a   :  { %25 = dma.hbm_to_vmem [thread:$0]  %s2068_s0, 256, %s20_s23, [#allocation3], %s1910_s25, %s1910_s25, %s1911_s26  }
  0x1b   :  { %s1912_s29 = smov [#allocation7]  }
  0x1c   :  { %s43_s30 = sshll.u32 %s1912_s29, 4  ;;  %s44_s30 = int_to_ptr.vmem [resolvable:$true] %s43_s30 }
  0x1d   :  { %s1846_s1 = scalar_lea.vmem %s44_s30, 160  ;;  %p1851_p11 = scmp.lt.s32.totalorder %s44_s30, %s44_s30 }
  0x1e   :  { %p1847_p10 = scmp.ne.s32.totalorder %s44_s30, %s1846_s1  ;;  %p1852_p12 = scmp.lt.s32.totalorder %s1846_s1, %s1846_s1 }
  0x20   :  { %p1853_p13 = por %p1852_p12, %p1851_p11 }
  0x22   :  { %p1854_p0 = pnand %p1853_p13, %p1847_p10 }
  0x24   :  { %1857 = shalt.err (!%p1854_p0)
}
  0x25   :  { %s1913_s5 = smov 16   ;;  %s1914_s6 = smov 1  }
  0x26   :  { %49 = dma.hbm_to_vmem [thread:$0]  %s2070_s2, 160, %s44_s30, [#allocation6], %s1913_s5, %s1913_s5, %s1914_s6  }
  0x27   :  { %1898 = dma.done.wait [#allocation3], 256  }
  0x28   :  { %1899 = vsyncadd [#allocation3], 4294967040 }
  0x29   :  { %1900 = dma.done.wait [#allocation6], 10400  }
  0x2a   :  { %1901 = vsyncadd [#allocation6], 4294956896  ;;  %v1915_v0 = vmov 0.0   ;;  %vm1916_vm0 = vmmov 0   ;;  %v1706_v1 = vld [vmem:[#allocation5 + $0x38] sm:$0xff]   ;;  %v1707_v2 = vld [vmem:[#allocation5 + $0x30] sm:$0xff]  }
  0x2b   :  { %1493 = vmatprep.subr.bf16.mxu0 %v1915_v0  ;;  %1509 = vmatprep.mubr.msk.bf16.mxu0 %vm1916_vm0, %v1915_v0  ;;  %v1708_v3 = vld [vmem:[#allocation5 + $0x28] sm:$0xff]   ;;  %v1714_v4 = vld [vmem:[#allocation5 + $0x78] sm:$0xff]   ;;  %v1709_v5 = vld [vmem:[#allocation5 + $0x20] sm:$0xff]   ;;  %s1917_s0 = smov [#allocation9]  }
  0x2c   :  { %1513 = vmatprep.subr.bf16.mxu1 %v1915_v0  ;;  %1529 = vmatprep.mubr.msk.bf16.mxu1 %vm1916_vm0, %v1915_v0  ;;  %v1715_v6 = vld [vmem:[#allocation5 + $0x70] sm:$0xff]   ;;  %v1710_v7 = vld [vmem:[#allocation5 + $0x18] sm:$0xff]   ;;  %v1716_v8 = vld [vmem:[#allocation5 + $0x68] sm:$0xff]   ;;  %s1276_s2 = sshll.u32 %s1917_s0, 4  ;;  %s1277_s2 = int_to_ptr.vmem [resolvable:$true] %s1276_s2 }
  0x2d   :  { %1494 = vmatpush3.bf16.msra.mxu0 %v1706_v1  ;;  %1514 = vmatpush3.bf16.msra.mxu1 %v1714_v4  ;;  %v1711_v9 = vld [vmem:[#allocation5 + $0x10] sm:$0xff]   ;;  %v1717_v10 = vld [vmem:[#allocation5 + $0x60] sm:$0xff]   ;;  %v1712_v11 = vld [vmem:[#allocation5 + $0x8] sm:$0xff]   ;;  %s1858_s9 = scalar_lea.vmem %s1277_s2, 128  ;;  %p1863_p2 = scmp.lt.s32.totalorder %s1277_s2, %s1277_s2 }
  0x2e   :  { %1495 = vmatprep.subr.bf16.mxu0 %v1915_v0  ;;  %1515 = vmatprep.subr.bf16.mxu1 %v1915_v0  ;;  %v1718_v12 = vld [vmem:[#allocation5 + $0x58] sm:$0xff]   ;;  %v1713_v13 = vld [vmem:[#allocation5] sm:$0xff]   ;;  %v60_v14 = vld [vmem:[#allocation2] sm:$0xff]  ;;  %p1859_p1 = scmp.ne.s32.totalorder %s1277_s2, %s1858_s9  ;;  %p1864_p3 = scmp.lt.s32.totalorder %s1858_s9, %s1858_s9 }
  0x2f   :  { %v61_v15 = vld [vmem:[#allocation2 + $0x8] sm:$0xff]  ;;  %v1719_v17 = vld [vmem:[#allocation5 + $0x50] sm:$0xff]   ;;  %v1720_v18 = vld [vmem:[#allocation5 + $0x48] sm:$0xff]  }
  0x30   :  { %v62_v16 = vpack.c.bf16 %v61_v15, %v60_v14  ;;  %v1721_v19 = vld [vmem:[#allocation5 + $0x40] sm:$0xff]   ;;  %v1722_v20 = vld [vmem:[#allocation5 + $0xb8] sm:$0xff]   ;;  %v1723_v21 = vld [vmem:[#allocation5 + $0xb0] sm:$0xff]   ;;  %p1865_p4 = por %p1864_p3, %p1863_p2 }
  0x31   :  { %1496 = vmatpush3.bf16.msra.mxu0 %v1707_v2  ;;  %1516 = vmatpush3.bf16.msra.mxu1 %v1715_v6  ;;  %v1724_v22 = vld [vmem:[#allocation5 + $0xa8] sm:$0xff]   ;;  %v1725_v23 = vld [vmem:[#allocation5 + $0xa0] sm:$0xff]   ;;  %v1726_v24 = vld [vmem:[#allocation5 + $0x98] sm:$0xff]  }
  0x32   :  { %1497 = vmatprep.subr.bf16.mxu0 %v1915_v0  ;;  %1517 = vmatprep.subr.bf16.mxu1 %v1915_v0  ;;  %v1293_v25 = vld [vmem:[#allocation7] ss:$0 sm:$0xff]  ;;  %v1727_v35 = vld [vmem:[#allocation5 + $0x90] sm:$0xff]   ;;  %v1728_v36 = vld [vmem:[#allocation5 + $0x88] sm:$0xff]   ;;  %p1866_p5 = pnand %p1865_p4, %p1859_p1 }
  0x33   :  { %v1729_v37 = vld [vmem:[#allocation5 + $0x80] sm:$0xff]   ;;  %v1730_v38 = vld [vmem:[#allocation5 + $0xf8] sm:$0xff]   ;;  %v1731_v39 = vld [vmem:[#allocation5 + $0xf0] sm:$0xff]  }
  0x34   :  { %v1732_v40 = vld [vmem:[#allocation5 + $0xe8] sm:$0xff]   ;;  %v1733_v41 = vld [vmem:[#allocation5 + $0xe0] sm:$0xff]   ;;  %v1734_v42 = vld [vmem:[#allocation5 + $0xd8] sm:$0xff]  }
  0x35   :  { %1498 = vmatpush3.bf16.msra.mxu0 %v1708_v3  ;;  %1518 = vmatpush3.bf16.msra.mxu1 %v1716_v8  ;;  %v1302_v43 = vld [vmem:[#allocation7 + $0x1] ss:$0 sm:$0xff]  ;;  %v1735_v53 = vld [vmem:[#allocation5 + $0xd0] sm:$0xff]   ;;  %v1736_v54 = vld [vmem:[#allocation5 + $0xc8] sm:$0xff]  }
  0x36   :  { %1499 = vmatprep.subr.bf16.mxu0 %v1915_v0  ;;  %1519 = vmatprep.subr.bf16.mxu1 %v1915_v0  ;;  %v1737_v55 = vld [vmem:[#allocation5 + $0xc0] sm:$0xff]   ;;  %v1738_v56 = vld [vmem:[#allocation5 + $0x138] sm:$0xff]   ;;  %v1739_v57 = vld [vmem:[#allocation5 + $0x130] sm:$0xff]  }
  0x37   :  { %v1740_v58 = vld [vmem:[#allocation5 + $0x128] sm:$0xff]   ;;  %v1741_v59 = vld [vmem:[#allocation5 + $0x120] sm:$0xff]   ;;  %v1742_v60 = vld [vmem:[#allocation5 + $0x118] sm:$0xff]  }
  0x38   :  { %v1311_v61 = vld [vmem:[#allocation7 + $0x2] ss:$0 sm:$0xff]  ;;  %v1743_v8 = vld [vmem:[#allocation5 + $0x110] sm:$0xff]  }
  0x39   :  { %1500 = vmatpush3.bf16.msra.mxu0 %v1709_v5  ;;  %1520 = vmatpush3.bf16.msra.mxu1 %v1717_v10  ;;  %v1745_v10 = vld [vmem:[#allocation5 + $0x100] sm:$0xff]  }
  0x3a   :  { %1501 = vmatprep.subr.bf16.mxu0 %v1915_v0  ;;  %1521 = vmatprep.subr.bf16.mxu1 %v1915_v0 }
  0x3d   :  { %1502 = vmatpush3.bf16.msra.mxu0 %v1710_v7  ;;  %1522 = vmatpush3.bf16.msra.mxu1 %v1718_v12  ;;  %v1747_v12 = vld [vmem:[#allocation5 + $0x170] sm:$0xff]  }
  0x3e   :  { %1503 = vmatprep.subr.bf16.mxu0 %v1915_v0  ;;  %1523 = vmatprep.subr.bf16.mxu1 %v1915_v0 }
  0x41   :  { %1504 = vmatpush3.bf16.msra.mxu0 %v1711_v9  ;;  %1524 = vmatpush3.bf16.msra.mxu1 %v1719_v17  ;;  %v1744_v9 = vld [vmem:[#allocation5 + $0x108] sm:$0xff]  }
  0x42   :  { %1505 = vmatprep.subr.bf16.mxu0 %v1915_v0  ;;  %1525 = vmatprep.subr.bf16.mxu1 %v1915_v0 }
  0x45   :  { %1506 = vmatpush3.bf16.msra.mxu0 %v1712_v11  ;;  %1526 = vmatpush3.bf16.msra.mxu1 %v1720_v18  ;;  %v1746_v11 = vld [vmem:[#allocation5 + $0x178] sm:$0xff]  }
  0x46   :  { %1507 = vmatprep.subr.bf16.mxu0 %v1915_v0  ;;  %1527 = vmatprep.subr.bf16.mxu1 %v1915_v0 }
  0x49   :  { %1508 = vmatpush3.bf16.msra.mxu0 %v1713_v13  ;;  %1528 = vmatpush3.bf16.msra.mxu1 %v1721_v19  ;;  %v1320_v13 = vld [vmem:[#allocation7 + $0x3] ss:$0 sm:$0xff] }
  0x4a   :  { %1533 = vmatprep.subr.bf16.mxu0 %v1915_v0  ;;  %1553 = vmatprep.subr.bf16.mxu1 %v1915_v0 }
  0x4c   :  { %1510 = vmatmul.mubr.bf16.vlgmr.msra.gmra.mxu0 %v62_v16 }
  0x4d   :  { %1549 = vmatprep.mubr.msk.bf16.mxu0 %vm1916_vm0, %v1915_v0  ;;  %1534 = vmatpush3.bf16.msra.mxu0 %v1722_v20 }
  0x4e   :  { %1535 = vmatprep.subr.bf16.mxu0 %v1915_v0 }
  0x51   :  { %1536 = vmatpush3.bf16.msra.mxu0 %v1723_v21 }
  0x52   :  { %1537 = vmatprep.subr.bf16.mxu0 %v1915_v0 }
  0x55   :  { %1538 = vmatpush3.bf16.msra.mxu0 %v1724_v22 }
  0x56   :  { %1539 = vmatprep.subr.bf16.mxu0 %v1915_v0 }
  0x59   :  { %1540 = vmatpush3.bf16.msra.mxu0 %v1725_v23  ;;  %v1748_v23 = vld [vmem:[#allocation5 + $0x168] sm:$0xff]  }
  0x5a   :  { %1541 = vmatprep.subr.bf16.mxu0 %v1915_v0 }
  0x5d   :  { %1542 = vmatpush3.bf16.msra.mxu0 %v1726_v24  ;;  %v1749_v24 = vld [vmem:[#allocation5 + $0x160] sm:$0xff]  }
  0x5e   :  { %1543 = vmatprep.subr.bf16.mxu0 %v1915_v0 }
  0x61   :  { %1544 = vmatpush3.bf16.msra.mxu0 %v1727_v35 }
  0x62   :  { %1545 = vmatprep.subr.bf16.mxu0 %v1915_v0 }
  0x65   :  { %1546 = vmatpush3.bf16.msra.mxu0 %v1728_v36 }
  0x66   :  { %1547 = vmatprep.subr.bf16.mxu0 %v1915_v0 }
  0x69   :  { %1548 = vmatpush3.bf16.msra.mxu0 %v1729_v37 }
  0x6a   :  { %1573 = vmatprep.subr.bf16.mxu0 %v1915_v0 }
 0x10c   :  { %v168_v26 = vpop.f32.mrf.mxu0 }
 0x10d   :  { %v169_v28 = vadd.f32 %v1293_v25, %v168_v26  ;;  %v1751_v26 = vld [vmem:[#allocation5 + $0x150] sm:$0xff]  }
 0x10e   :  { %v1511_v27 = vpop.f32.mrf.mxu0 }
 0x10f   :  { %v175_v32 = vmax.f32 %v169_v28, 0.0  ;;  %v1752_v27 = vld [vmem:[#allocation5 + $0x148] sm:$0xff]   ;;  %v1753_v28 = vld [vmem:[#allocation5 + $0x140] sm:$0xff]  }
 0x110   :  { %v171_v29 = vpop.f32.mrf.mxu0 }
 0x111   :  { %v172_v30 = vadd.f32 %v1293_v25, %v171_v29  ;;  %v1750_v25 = vld [vmem:[#allocation5 + $0x158] sm:$0xff]  }
 0x112   :  { %v1512_v31 = vpop.f32.mrf.mxu0  ;;  %v1754_v29 = vld [vmem:[#allocation5 + $0x1b8] sm:$0xff]  }
 0x113   :  { %v176_v33 = vmax.f32 %v172_v30, 0.0  ;;  %v1755_v30 = vld [vmem:[#allocation5 + $0x1b0] sm:$0xff]   ;;  %v1756_v31 = vld [vmem:[#allocation5 + $0x1a8] sm:$0xff]  }
 0x115   :  { %v177_v34 = vpack.c.bf16 %v176_v33, %v175_v32  ;;  %v1757_v32 = vld [vmem:[#allocation5 + $0x1a0] sm:$0xff]   ;;  %v1758_v33 = vld [vmem:[#allocation5 + $0x198] sm:$0xff]  }
 0x117   :  { %1530 = vmatmul.mubr.bf16.vlgmr.msra.gmra.mxu1 %v177_v34  ;;  %v1329_v34 = vld [vmem:[#allocation7 + $0x4] ss:$0 sm:$0xff] }
 0x118   :  { %1569 = vmatprep.mubr.msk.bf16.mxu1 %vm1916_vm0, %v1915_v0  ;;  %1554 = vmatpush3.bf16.msra.mxu1 %v1730_v38 }
 0x119   :  { %1555 = vmatprep.subr.bf16.mxu1 %v1915_v0 }
 0x11c   :  { %1556 = vmatpush3.bf16.msra.mxu1 %v1731_v39 }
 0x11d   :  { %1557 = vmatprep.subr.bf16.mxu1 %v1915_v0 }
 0x120   :  { %1558 = vmatpush3.bf16.msra.mxu1 %v1732_v40 }
 0x121   :  { %1559 = vmatprep.subr.bf16.mxu1 %v1915_v0 }
 0x124   :  { %1560 = vmatpush3.bf16.msra.mxu1 %v1733_v41 }
 0x125   :  { %1561 = vmatprep.subr.bf16.mxu1 %v1915_v0 }
 0x128   :  { %1562 = vmatpush3.bf16.msra.mxu1 %v1734_v42 }
 0x129   :  { %1563 = vmatprep.subr.bf16.mxu1 %v1915_v0 }
 0x12c   :  { %1564 = vmatpush3.bf16.msra.mxu1 %v1735_v53 }
 0x12d   :  { %1565 = vmatprep.subr.bf16.mxu1 %v1915_v0 }
 0x130   :  { %1566 = vmatpush3.bf16.msra.mxu1 %v1736_v54 }
 0x131   :  { %1567 = vmatprep.subr.bf16.mxu1 %v1915_v0 }
 0x134   :  { %1568 = vmatpush3.bf16.msra.mxu1 %v1737_v55 }
 0x135   :  { %1593 = vmatprep.subr.bf16.mxu1 %v1915_v0 }
 0x1d7   :  { %v285_v44 = vpop.f32.mrf.mxu1 }
 0x1d8   :  { %v286_v46 = vadd.f32 %v1302_v43, %v285_v44  ;;  %v1759_v44 = vld [vmem:[#allocation5 + $0x190] sm:$0xff]  }
 0x1d9   :  { %v1531_v45 = vpop.f32.mrf.mxu1 }
 0x1da   :  { %v292_v50 = vmax.f32 %v286_v46, 0.0  ;;  %v1760_v45 = vld [vmem:[#allocation5 + $0x188] sm:$0xff]   ;;  %v1761_v46 = vld [vmem:[#allocation5 + $0x180] sm:$0xff]  }
 0x1db   :  { %v288_v47 = vpop.f32.mrf.mxu1 }
 0x1dc   :  { %v289_v48 = vadd.f32 %v1302_v43, %v288_v47  ;;  %v1762_v47 = vld [vmem:[#allocation5 + $0x1f8] sm:$0xff]  }
 0x1dd   :  { %v1532_v49 = vpop.f32.mrf.mxu1 }
 0x1de   :  { %v293_v51 = vmax.f32 %v289_v48, 0.0  ;;  %v1763_v48 = vld [vmem:[#allocation5 + $0x1f0] sm:$0xff]   ;;  %v1764_v49 = vld [vmem:[#allocation5 + $0x1e8] sm:$0xff]  }
 0x1e0   :  { %v294_v52 = vpack.c.bf16 %v293_v51, %v292_v50  ;;  %v1765_v50 = vld [vmem:[#allocation5 + $0x1e0] sm:$0xff]   ;;  %v1766_v51 = vld [vmem:[#allocation5 + $0x1d8] sm:$0xff]  }
 0x1e2   :  { %1550 = vmatmul.mubr.bf16.vlgmr.msra.gmra.mxu0 %v294_v52  ;;  %v1340_v52 = vld [vmem:[#allocation7 + $0x5] ss:$0 sm:$0xff] }
 0x1e3   :  { %1589 = vmatprep.mubr.msk.bf16.mxu0 %vm1916_vm0, %v1915_v0  ;;  %1574 = vmatpush3.bf16.msra.mxu0 %v1738_v56 }
 0x1e4   :  { %1575 = vmatprep.subr.bf16.mxu0 %v1915_v0 }
 0x1e7   :  { %1576 = vmatpush3.bf16.msra.mxu0 %v1739_v57 }
 0x1e8   :  { %1577 = vmatprep.subr.bf16.mxu0 %v1915_v0 }
 0x1eb   :  { %1578 = vmatpush3.bf16.msra.mxu0 %v1740_v58 }
 0x1ec   :  { %1579 = vmatprep.subr.bf16.mxu0 %v1915_v0 }
 0x1ef   :  { %1580 = vmatpush3.bf16.msra.mxu0 %v1741_v59 }
 0x1f0   :  { %1581 = vmatprep.subr.bf16.mxu0 %v1915_v0 }
 0x1f3   :  { %1582 = vmatpush3.bf16.msra.mxu0 %v1742_v60 }
 0x1f4   :  { %1583 = vmatprep.subr.bf16.mxu0 %v1915_v0 }
 0x1f7   :  { %1584 = vmatpush3.bf16.msra.mxu0 %v1743_v8 }
 0x1f8   :  { %1585 = vmatprep.subr.bf16.mxu0 %v1915_v0 }
 0x1fb   :  { %1586 = vmatpush3.bf16.msra.mxu0 %v1744_v9 }
 0x1fc   :  { %1587 = vmatprep.subr.bf16.mxu0 %v1915_v0 }
 0x1ff   :  { %1588 = vmatpush3.bf16.msra.mxu0 %v1745_v10 }
 0x200   :  { %1613 = vmatprep.subr.bf16.mxu0 %v1915_v0 }
 0x2a2   :  { %v402_v62 = vpop.f32.mrf.mxu0 }
 0x2a3   :  { %v403_v1 = vadd.f32 %v1311_v61, %v402_v62  ;;  %v1767_v62 = vld [vmem:[#allocation5 + $0x1d0] sm:$0xff]  }
 0x2a4   :  { %v1551_v63 = vpop.f32.mrf.mxu0 }
 0x2a5   :  { %v409_v5 = vmax.f32 %v403_v1, 0.0  ;;  %v1768_v63 = vld [vmem:[#allocation5 + $0x1c8] sm:$0xff]   ;;  %v1769_v1 = vld [vmem:[#allocation5 + $0x1c0] sm:$0xff]  }
 0x2a6   :  { %v405_v2 = vpop.f32.mrf.mxu0 }
 0x2a7   :  { %v406_v3 = vadd.f32 %v1311_v61, %v405_v2  ;;  %v1770_v2 = vld [vmem:[#allocation5 + $0x238] sm:$0xff]  }
 0x2a8   :  { %v1552_v4 = vpop.f32.mrf.mxu0 }
 0x2a9   :  { %v410_v6 = vmax.f32 %v406_v3, 0.0  ;;  %v1771_v3 = vld [vmem:[#allocation5 + $0x230] sm:$0xff]   ;;  %v1772_v4 = vld [vmem:[#allocation5 + $0x228] sm:$0xff]  }
 0x2ab   :  { %v411_v7 = vpack.c.bf16 %v410_v6, %v409_v5  ;;  %v1773_v5 = vld [vmem:[#allocation5 + $0x220] sm:$0xff]   ;;  %v1774_v6 = vld [vmem:[#allocation5 + $0x218] sm:$0xff]  }
 0x2ad   :  { %1570 = vmatmul.mubr.bf16.vlgmr.msra.gmra.mxu1 %v411_v7  ;;  %v1349_v7 = vld [vmem:[#allocation7 + $0x6] ss:$0 sm:$0xff] }
 0x2ae   :  { %1609 = vmatprep.mubr.msk.bf16.mxu1 %vm1916_vm0, %v1915_v0  ;;  %1594 = vmatpush3.bf16.msra.mxu1 %v1746_v11 }
 0x2af   :  { %1595 = vmatprep.subr.bf16.mxu1 %v1915_v0 }
 0x2b2   :  { %1596 = vmatpush3.bf16.msra.mxu1 %v1747_v12 }
 0x2b3   :  { %1597 = vmatprep.subr.bf16.mxu1 %v1915_v0 }
 0x2b6   :  { %1598 = vmatpush3.bf16.msra.mxu1 %v1748_v23  ;;  %v1781_v23 = vld [vmem:[#allocation5 + $0x260] sm:$0xff]  }
 0x2b7   :  { %1599 = vmatprep.subr.bf16.mxu1 %v1915_v0 }
 0x2ba   :  { %1600 = vmatpush3.bf16.msra.mxu1 %v1749_v24  ;;  %v1782_v24 = vld [vmem:[#allocation5 + $0x258] sm:$0xff]  }
 0x2bb   :  { %1601 = vmatprep.subr.bf16.mxu1 %v1915_v0 }
 0x2be   :  { %1602 = vmatpush3.bf16.msra.mxu1 %v1750_v25  ;;  %v1358_v25 = vld [vmem:[#allocation7 + $0x7] ss:$0 sm:$0xff] }
 0x2bf   :  { %1603 = vmatprep.subr.bf16.mxu1 %v1915_v0 }
 0x2c2   :  { %1604 = vmatpush3.bf16.msra.mxu1 %v1751_v26 }
 0x2c3   :  { %1605 = vmatprep.subr.bf16.mxu1 %v1915_v0 }
 0x2c6   :  { %1606 = vmatpush3.bf16.msra.mxu1 %v1752_v27 }
 0x2c7   :  { %1607 = vmatprep.subr.bf16.mxu1 %v1915_v0 }
 0x2ca   :  { %1608 = vmatpush3.bf16.msra.mxu1 %v1753_v28 }
 0x2cb   :  { %1633 = vmatprep.subr.bf16.mxu1 %v1915_v0 }
 0x36d   :  { %v519_v14 = vpop.f32.mrf.mxu1 }
 0x36e   :  { %v520_v16 = vadd.f32 %v1320_v13, %v519_v14 }
 0x36f   :  { %v1571_v15 = vpop.f32.mrf.mxu1 }
 0x370   :  { %v526_v20 = vmax.f32 %v520_v16, 0.0 }
 0x371   :  { %v522_v17 = vpop.f32.mrf.mxu1 }
 0x372   :  { %v523_v18 = vadd.f32 %v1320_v13, %v522_v17  ;;  %v1775_v17 = vld [vmem:[#allocation5 + $0x210] sm:$0xff]  }
 0x373   :  { %v1572_v19 = vpop.f32.mrf.mxu1 }
 0x374   :  { %v527_v21 = vmax.f32 %v523_v18, 0.0  ;;  %v1776_v18 = vld [vmem:[#allocation5 + $0x208] sm:$0xff]   ;;  %v1777_v19 = vld [vmem:[#allocation5 + $0x200] sm:$0xff]  }
 0x376   :  { %v528_v22 = vpack.c.bf16 %v527_v21, %v526_v20  ;;  %v1778_v20 = vld [vmem:[#allocation5 + $0x278] sm:$0xff]   ;;  %v1779_v21 = vld [vmem:[#allocation5 + $0x270] sm:$0xff]  }
 0x378   :  { %1590 = vmatmul.mubr.bf16.vlgmr.msra.gmra.mxu0 %v528_v22  ;;  %v1780_v22 = vld [vmem:[#allocation5 + $0x268] sm:$0xff]  }
 0x379   :  { %1629 = vmatprep.mubr.msk.bf16.mxu0 %vm1916_vm0, %v1915_v0  ;;  %1614 = vmatpush3.bf16.msra.mxu0 %v1754_v29 }
 0x37a   :  { %1615 = vmatprep.subr.bf16.mxu0 %v1915_v0 }
 0x37d   :  { %1616 = vmatpush3.bf16.msra.mxu0 %v1755_v30 }
 0x37e   :  { %1617 = vmatprep.subr.bf16.mxu0 %v1915_v0 }
 0x381   :  { %1618 = vmatpush3.bf16.msra.mxu0 %v1756_v31 }
 0x382   :  { %1619 = vmatprep.subr.bf16.mxu0 %v1915_v0 }
 0x385   :  { %1620 = vmatpush3.bf16.msra.mxu0 %v1757_v32 }
 0x386   :  { %1621 = vmatprep.subr.bf16.mxu0 %v1915_v0 }
 0x389   :  { %1622 = vmatpush3.bf16.msra.mxu0 %v1758_v33 }
 0x38a   :  { %1623 = vmatprep.subr.bf16.mxu0 %v1915_v0 }
 0x38d   :  { %1624 = vmatpush3.bf16.msra.mxu0 %v1759_v44 }
 0x38e   :  { %1625 = vmatprep.subr.bf16.mxu0 %v1915_v0 }
 0x391   :  { %1626 = vmatpush3.bf16.msra.mxu0 %v1760_v45 }
 0x392   :  { %1627 = vmatprep.subr.bf16.mxu0 %v1915_v0 }
 0x395   :  { %1628 = vmatpush3.bf16.msra.mxu0 %v1761_v46 }
 0x396   :  { %1653 = vmatprep.subr.bf16.mxu0 %v1915_v0 }
 0x438   :  { %v636_v35 = vpop.f32.mrf.mxu0 }
 0x439   :  { %v637_v36 = vadd.f32 %v1329_v34, %v636_v35  ;;  %v1783_v35 = vld [vmem:[#allocation5 + $0x250] sm:$0xff]  }
 0x43a   :  { %v1591_v37 = vpop.f32.mrf.mxu0 }
 0x43b   :  { %1786 = vtanh.f32 %v637_v36  ;;  %v1784_v36 = vld [vmem:[#allocation5 + $0x248] sm:$0xff]   ;;  %v1785_v37 = vld [vmem:[#allocation5 + $0x240] sm:$0xff]  }
 0x43c   :  { %v639_v38 = vpop.f32.mrf.mxu0 }
 0x43d   :  { %v640_v39 = vadd.f32 %v1329_v34, %v639_v38  ;;  %v1367_v38 = vld [vmem:[#allocation7 + $0x8] ss:$0 sm:$0xff] }
 0x43e   :  { %v1592_v40 = vpop.f32.mrf.mxu0 }
 0x43f   :  { %1788 = vtanh.f32 %v640_v39 }
 0x448   :  { %v1787_v41 = vpop.eup %1786 }
 0x44c   :  { %v1789_v42 = vpop.eup %1788 }
 0x44d   :  { %v645_v43 = vpack.c.bf16 %v1789_v42, %v1787_v41 }
 0x44f   :  { %1610 = vmatmul.mubr.bf16.vlgmr.msra.gmra.mxu1 %v645_v43  ;;  %1397 = vst [vmem:[#allocation9] sm:$0xff] %v645_v43  }
 0x450   :  { %1649 = vmatprep.mubr.msk.bf16.mxu1 %vm1916_vm0, %v1915_v0  ;;  %1634 = vmatpush3.bf16.msra.mxu1 %v1762_v47 }
 0x451   :  { %1635 = vmatprep.subr.bf16.mxu1 %v1915_v0 }
 0x454   :  { %1636 = vmatpush3.bf16.msra.mxu1 %v1763_v48 }
 0x455   :  { %1637 = vmatprep.subr.bf16.mxu1 %v1915_v0 }
 0x458   :  { %1638 = vmatpush3.bf16.msra.mxu1 %v1764_v49 }
 0x459   :  { %1639 = vmatprep.subr.bf16.mxu1 %v1915_v0 }
 0x45c   :  { %1640 = vmatpush3.bf16.msra.mxu1 %v1765_v50 }
 0x45d   :  { %1641 = vmatprep.subr.bf16.mxu1 %v1915_v0 }
 0x460   :  { %1642 = vmatpush3.bf16.msra.mxu1 %v1766_v51 }
 0x461   :  { %1643 = vmatprep.subr.bf16.mxu1 %v1915_v0 }
 0x464   :  { %1644 = vmatpush3.bf16.msra.mxu1 %v1767_v62 }
 0x465   :  { %1645 = vmatprep.subr.bf16.mxu1 %v1915_v0 }
 0x468   :  { %1646 = vmatpush3.bf16.msra.mxu1 %v1768_v63 }
 0x469   :  { %1647 = vmatprep.subr.bf16.mxu1 %v1915_v0 }
 0x46c   :  { %1648 = vmatpush3.bf16.msra.mxu1 %v1769_v1 }
 0x46d   :  { %1673 = vmatprep.subr.bf16.mxu1 %v1915_v0 }
 0x50f   :  { %v762_v53 = vpop.f32.mrf.mxu1 }
 0x510   :  { %v763_v55 = vadd.f32 %v1340_v52, %v762_v53 }
 0x511   :  { %v1611_v54 = vpop.f32.mrf.mxu1 }
 0x512   :  { %v769_v59 = vmax.f32 %v763_v55, 0.0 }
 0x513   :  { %v765_v56 = vpop.f32.mrf.mxu1 }
 0x514   :  { %v766_v57 = vadd.f32 %v1340_v52, %v765_v56 }
 0x515   :  { %v1612_v58 = vpop.f32.mrf.mxu1 }
 0x516   :  { %v770_v60 = vmax.f32 %v766_v57, 0.0 }
 0x518   :  { %v771_v61 = vpack.c.bf16 %v770_v60, %v769_v59 }
 0x51a   :  { %1630 = vmatmul.mubr.bf16.vlgmr.msra.gmra.mxu0 %v771_v61 }
 0x51b   :  { %1669 = vmatprep.mubr.msk.bf16.mxu0 %vm1916_vm0, %v1915_v0  ;;  %1654 = vmatpush3.bf16.msra.mxu0 %v1770_v2 }
 0x51c   :  { %1655 = vmatprep.subr.bf16.mxu0 %v1915_v0 }
 0x51f   :  { %1656 = vmatpush3.bf16.msra.mxu0 %v1771_v3 }
 0x520   :  { %1657 = vmatprep.subr.bf16.mxu0 %v1915_v0 }
 0x523   :  { %1658 = vmatpush3.bf16.msra.mxu0 %v1772_v4 }
 0x524   :  { %1659 = vmatprep.subr.bf16.mxu0 %v1915_v0 }
 0x527   :  { %1660 = vmatpush3.bf16.msra.mxu0 %v1773_v5 }
 0x528   :  { %1661 = vmatprep.subr.bf16.mxu0 %v1915_v0 }
 0x52b   :  { %1662 = vmatpush3.bf16.msra.mxu0 %v1774_v6 }
 0x52c   :  { %1663 = vmatprep.subr.bf16.mxu0 %v1915_v0 }
 0x52f   :  { %1664 = vmatpush3.bf16.msra.mxu0 %v1775_v17 }
 0x530   :  { %1665 = vmatprep.subr.bf16.mxu0 %v1915_v0 }
 0x533   :  { %1666 = vmatpush3.bf16.msra.mxu0 %v1776_v18 }
 0x534   :  { %1667 = vmatprep.subr.bf16.mxu0 %v1915_v0 }
 0x537   :  { %1668 = vmatpush3.bf16.msra.mxu0 %v1777_v19 }
 0x5da   :  { %v879_v8 = vpop.f32.mrf.mxu0 }
 0x5db   :  { %v880_v10 = vadd.f32 %v1349_v7, %v879_v8 }
 0x5dc   :  { %v1631_v9 = vpop.f32.mrf.mxu0 }
 0x5dd   :  { %v886_v14 = vmax.f32 %v880_v10, 0.0 }
 0x5de   :  { %v882_v11 = vpop.f32.mrf.mxu0 }
 0x5df   :  { %v883_v12 = vadd.f32 %v1349_v7, %v882_v11 }
 0x5e0   :  { %v1632_v13 = vpop.f32.mrf.mxu0 }
 0x5e1   :  { %v887_v15 = vmax.f32 %v883_v12, 0.0 }
 0x5e3   :  { %v888_v16 = vpack.c.bf16 %v887_v15, %v886_v14 }
 0x5e5   :  { %1650 = vmatmul.mubr.bf16.vlgmr.msra.gmra.mxu1 %v888_v16 }
 0x5e6   :  { %1689 = vmatprep.mubr.msk.bf16.mxu1 %vm1916_vm0, %v1915_v0  ;;  %1674 = vmatpush3.bf16.msra.mxu1 %v1778_v20 }
 0x5e7   :  { %1675 = vmatprep.subr.bf16.mxu1 %v1915_v0 }
 0x5ea   :  { %1676 = vmatpush3.bf16.msra.mxu1 %v1779_v21 }
 0x5eb   :  { %1677 = vmatprep.subr.bf16.mxu1 %v1915_v0 }
 0x5ee   :  { %1678 = vmatpush3.bf16.msra.mxu1 %v1780_v22 }
 0x5ef   :  { %1679 = vmatprep.subr.bf16.mxu1 %v1915_v0 }
 0x5f2   :  { %1680 = vmatpush3.bf16.msra.mxu1 %v1781_v23 }
 0x5f3   :  { %1681 = vmatprep.subr.bf16.mxu1 %v1915_v0 }
 0x5f6   :  { %1682 = vmatpush3.bf16.msra.mxu1 %v1782_v24 }
 0x5f7   :  { %1683 = vmatprep.subr.bf16.mxu1 %v1915_v0 }
 0x5fa   :  { %1684 = vmatpush3.bf16.msra.mxu1 %v1783_v35 }
 0x5fb   :  { %1685 = vmatprep.subr.bf16.mxu1 %v1915_v0 }
 0x5fe   :  { %1686 = vmatpush3.bf16.msra.mxu1 %v1784_v36 }
 0x5ff   :  { %1687 = vmatprep.subr.bf16.mxu1 %v1915_v0 }
 0x602   :  { %1688 = vmatpush3.bf16.msra.mxu1 %v1785_v37 }
 0x6a5   :  { %v996_v26 = vpop.f32.mrf.mxu1 }
 0x6a6   :  { %v997_v28 = vadd.f32 %v1358_v25, %v996_v26 }
 0x6a7   :  { %v1651_v27 = vpop.f32.mrf.mxu1 }
 0x6a8   :  { %v1003_v32 = vmax.f32 %v997_v28, 0.0 }
 0x6a9   :  { %v999_v29 = vpop.f32.mrf.mxu1 }
 0x6aa   :  { %v1000_v30 = vadd.f32 %v1358_v25, %v999_v29 }
 0x6ab   :  { %v1652_v31 = vpop.f32.mrf.mxu1 }
 0x6ac   :  { %v1004_v33 = vmax.f32 %v1000_v30, 0.0 }
 0x6ae   :  { %v1005_v34 = vpack.c.bf16 %v1004_v33, %v1003_v32 }
 0x6b0   :  { %1670 = vmatmul.mubr.bf16.vlgmr.msra.gmra.mxu0 %v1005_v34 }
 0x770   :  { %v1113_v39 = vpop.f32.mrf.mxu0 }
 0x771   :  { %v1114_v41 = vadd.f32 %v1367_v38, %v1113_v39 }
 0x772   :  { %v1671_v40 = vpop.f32.mrf.mxu0 }
 0x773   :  { %v1120_v45 = vmax.f32 %v1114_v41, 0.0 }
 0x774   :  { %v1116_v42 = vpop.f32.mrf.mxu0 }
 0x775   :  { %v1117_v43 = vadd.f32 %v1367_v38, %v1116_v42 }
 0x776   :  { %v1672_v44 = vpop.f32.mrf.mxu0 }
 0x777   :  { %v1121_v46 = vmax.f32 %v1117_v43, 0.0 }
 0x779   :  { %v1122_v47 = vpack.c.bf16 %v1121_v46, %v1120_v45 }
 0x77b   :  { %1690 = vmatmul.mubr.bf16.vlgmr.msra.gmra.mxu1 %v1122_v47 }
 0x77c   :  { %1869 = shalt.err (!%p1866_p5)
}
 0x77d   :  { %1282 = dma.vmem_to_hbm [thread:$0]  %s1277_s2, 128, %s2072_s4, [#allocation10], %s1907_s18, %s1907_s18, %s1908_s19   ;;  %v1376_v0 = vld [vmem:[#allocation7 + $0x9] ss:$0 sm:$0xff] }
 0x77e   :  { %s1918_s12 = smov [#allocation8]  }
 0x77f   :  { %s1264_s13 = sshll.u32 %s1918_s12, 4  ;;  %s1265_s13 = int_to_ptr.vmem [resolvable:$true] %s1264_s13 }
 0x780   :  { %s1878_s4 = scalar_lea.vmem %s1265_s13, 128  ;;  %p1883_p7 = scmp.lt.s32.totalorder %s1265_s13, %s1265_s13 }
 0x781   :  { %p1879_p6 = scmp.ne.s32.totalorder %s1265_s13, %s1878_s4  ;;  %p1884_p8 = scmp.lt.s32.totalorder %s1878_s4, %s1878_s4 }
 0x783   :  { %p1885_p9 = por %p1884_p8, %p1883_p7 }
 0x785   :  { %p1886_p10 = pnand %p1885_p9, %p1879_p6 }
 0x83b   :  { %v1230_v48 = vpop.f32.mrf.mxu1 }
 0x83c   :  { %v1231_v49 = vadd.f32 %v1376_v0, %v1230_v48 }
 0x83d   :  { %v1691_v50 = vpop.f32.mrf.mxu1 }
 0x83e   :  { %v1385_v51 = vmul.f32 -1.442695, %v1231_v49 }
 0x83f   :  { %v1233_v52 = vpop.f32.mrf.mxu1 }
 0x840   :  { %1790 = vpow2.f32 %v1385_v51  ;;  %v1234_v53 = vadd.f32 %v1376_v0, %v1233_v52 }
 0x841   :  { %v1692_v54 = vpop.f32.mrf.mxu1 }
 0x842   :  { %v1386_v55 = vmul.f32 -1.442695, %v1234_v53 }
 0x844   :  { %1792 = vpow2.f32 %v1386_v55 }
 0x84d   :  { %v1791_v56 = vpop.eup %1790 }
 0x84e   :  { %v1243_v57 = vadd.f32 1.0, %v1791_v56 }
 0x850   :  { %1794 = vrcp.f32 %v1243_v57 }
 0x851   :  { %v1793_v58 = vpop.eup %1792 }
 0x852   :  { %v1244_v59 = vadd.f32 1.0, %v1793_v58 }
 0x854   :  { %1796 = vrcp.f32 %v1244_v59 }
 0x85d   :  { %v1795_v60 = vpop.eup %1794 }
 0x861   :  { %v1797_v61 = vpop.eup %1796 }
 0x862   :  { %v1401_v62 = vpack.c.bf16 %v1797_v61, %v1795_v60 }
 0x864   :  { %1402 = vst [vmem:[#allocation8] sm:$0xff] %v1401_v62  }
 0x865   :  { %1889 = shalt.err (!%p1886_p10)
}
 0x866   :  { %1270 = dma.vmem_to_hbm [thread:$0]  %s1265_s13, 128, %s2071_s3, [#allocation4], %s1907_s18, %s1907_s18, %s1908_s19  }
 0x867   :  { %1902 = dma.done.wait [#allocation4], 128  }
 0x868   :  { %1903 = vsyncadd [#allocation4], 4294967168 }
 0x869   :  { %1904 = dma.done.wait [#allocation10], 128  }
 0x86a   :  { %1905 = vsyncadd [#allocation10], 4294967168 }
 0x86b   :  { %1289 = vsyncpa [#allocation3], 1 }
 0x86c   :  { %1290 = vsyncpa [#allocation6], 1 }
 0x86d   :  { %1291 = vsyncpa [#allocation4], 1 }
 0x86e   :  { %1292 = vsyncpa [#allocation10], 1 }

</bundles_post_ra>
